<compile_context>
chip_gen: v7x
topology: tpu7x:2x2x1
jax: 0.10.0
libtpu: 0.0.40
codegen_flags: <defaults>
</compile_context>

<pallas_src>
import jax
import jax.numpy as jnp
from jax.experimental import pallas as pl
from jax.experimental.pallas import tpu as pltpu


# --------------------------------------------------------------------------
# Kernel
# --------------------------------------------------------------------------
def _poly_kernel(w_ref, x_ref, o_ref):
    """o = sum_i w[i] * x**i, evaluated with Horner's rule in float32.

    w_ref : SMEM (degree+1,) float32, scalar-prefetched.
    x_ref : VMEM tile (tile_rows, lanes) in the input dtype.
    o_ref : VMEM tile (tile_rows, lanes) in the output dtype.
    """
    x = x_ref[...].astype(jnp.float32)
    n = w_ref.shape[0]                            # static
    # Hoist all SMEM scalar reads out of the arithmetic chain.
    ws = [w_ref[i] for i in range(n)]
    if n == 1:
        acc = jnp.zeros_like(x) + ws[0]           # degree 0: constant fill
    else:
        # Start the Horner chain directly from x (saves a whole-tile splat).
        acc = x * ws[n - 1] + ws[n - 2]
        for i in range(n - 3, -1, -1):            # small static unroll
            acc = acc * x + ws[i]
    o_ref[...] = acc.astype(o_ref.dtype)


# --------------------------------------------------------------------------
# Wrapper helpers
# --------------------------------------------------------------------------
def _poly_jax(x_flat, w32):
    """Tiny pure-JAX Horner for ragged tails / sub-vreg inputs."""
    xf = x_flat.astype(jnp.float32)
    n = w32.shape[0]
    acc = jnp.zeros_like(xf) + w32[n - 1]
    for i in range(n - 2, -1, -1):
        acc = acc * xf + w32[i]
    return acc


def _sublane_multiple(dtype):
    # 8 for 4-byte dtypes, 16 for 2-byte, 32 for 1-byte.
    return max(8, 32 // jnp.dtype(dtype).itemsize)


def _chip_tile_budget():
    """(per-buffer tile bytes, scoped-VMEM limit or None) for this TPU gen."""
    kind = ""
    try:
        kind = jax.devices()[0].device_kind.lower()
    except Exception:
        pass
    if "v7" in kind:
        # 8 MiB tiles -> 32 MiB of double-buffered in+out blocks; raise the
        # 32 MiB scoped default (v7x physical VMEM is 64 MiB per core).
        return 8 << 20, 40 << 20
    if "v6" in kind:
        # 4 MiB tiles -> 16 MiB double-buffered, fits the 32 MiB default.
        return 4 << 20, None
    # v5e (16 MiB scoped default) and anything unknown: stay conservative.
    return 2 << 20, None


def _pick_lanes(total, sub):
    """Largest multiple-of-128 last dim that divides `total`, preferring one
    that still leaves >= 2*sub rows so the grid can have >= 2 steps."""
    candidates = (2048, 1024, 512, 256, 128)
    divisors = [c for c in candidates if total % c == 0]
    for c in divisors:                            # largest first
        if total // c >= 2 * sub:
            return c
    if divisors:
        return divisors[0]
    return 128                                    # ragged tail handled separately


# --------------------------------------------------------------------------
# Forward
# --------------------------------------------------------------------------
def mr_forward(x, w):
    """Elementwise sum_i w[i] * x**i via a Pallas TPU kernel."""
    orig_shape = x.shape
    in_dtype = x.dtype
    # Keep narrow float dtypes narrow in HBM; non-float inputs stay in their
    # own dtype on the way in and come out as float32 (PyTorch float-weight
    # promotion), with both casts fused into the kernel.
    if jnp.issubdtype(in_dtype, jnp.floating):
        out_dtype = jnp.dtype(in_dtype)
    else:
        out_dtype = jnp.dtype(jnp.float32)

    w32 = w.astype(jnp.float32)
    total = x.size
    flat = x.reshape(-1)

    sub = max(_sublane_multiple(in_dtype), _sublane_multiple(out_dtype))

    if total < 128:
        # Sub-vreg input: a kernel launch is pure overhead.
        return _poly_jax(flat, w32).astype(out_dtype).reshape(orig_shape)

    lanes = _pick_lanes(total, sub)
    bulk = (total // lanes) * lanes               # == total when lanes | total
    rows = bulk // lanes

    # Metadata-only reshape when lanes divides total (the common case).
    slab = (flat if bulk == total else flat[:bulk]).reshape(rows, lanes)

    # Generation-specific tile size; cap so the grid has >= 2 (ideally 4)
    # steps for v7x's two TensorCores; align to the sublane multiple.
    tile_bytes, vmem_limit = _chip_tile_budget()
    itemsize = max(jnp.dtype(in_dtype).itemsize, out_dtype.itemsize)
    tile_rows = max(sub, tile_bytes // (lanes * itemsize))
    if rows >= 4 * sub:
        min_steps = 4
    elif rows >= 2 * sub:
        min_steps = 2
    else:
        min_steps = 1
    tile_rows = min(tile_rows, pl.cdiv(rows, min_steps))
    if tile_rows >= rows:
        tile_rows = rows                          # full extent: always legal
    else:
        tile_rows = max(sub, (tile_rows // sub) * sub)
    grid = (pl.cdiv(rows, tile_rows),)

    degree = w32.shape[0] - 1
    cost = pl.CostEstimate(
        flops=2 * max(degree, 1) * bulk,
        transcendentals=0,
        bytes_accessed=bulk * (jnp.dtype(in_dtype).itemsize + out_dtype.itemsize),
    )

    out_bulk = pl.pallas_call(
        _poly_kernel,
        out_shape=jax.ShapeDtypeStruct((rows, lanes), out_dtype),
        grid_spec=pltpu.PrefetchScalarGridSpec(
            num_scalar_prefetch=1,                # w -> SMEM, passed first
            grid=grid,
            in_specs=[pl.BlockSpec((tile_rows, lanes), lambda i, wref: (i, 0))],
            out_specs=pl.BlockSpec((tile_rows, lanes), lambda i, wref: (i, 0)),
        ),
        compiler_params=pltpu.CompilerParams(
            dimension_semantics=("parallel",),
            vmem_limit_bytes=vmem_limit,
        ),
        cost_estimate=cost,
    )(w32, slab)

    out_flat = out_bulk.reshape(-1)
    if bulk != total:
        # Ragged (<128-elem) tail: compute inline and append; cheaper than
        # padding the whole slab and slicing the output back.
        tail = _poly_jax(flat[bulk:], w32).astype(out_dtype)
        out_flat = jnp.concatenate([out_flat, tail])
    return out_flat.reshape(orig_shape)


def mr_reference(x, w):
    """Pure-JAX reference matching the PyTorch forward loop."""
    ret = jnp.zeros(x.shape, dtype=jnp.float32)
    for i in range(w.shape[0]):
        ret = ret + w[i] * x.astype(jnp.float32) ** i
    return ret


if __name__ == "__main__":
    key = jax.random.PRNGKey(0)
    kx, _ = jax.random.split(key)

    polynomial_degree = 3                         # module stores degree+1 = 4 weights
    # The module initializes w to zeros (trivial output); use small non-zero
    # deterministic values so the check is meaningful.
    w = (jnp.arange(polynomial_degree + 1, dtype=jnp.float32) + 1.0) * 0.1

    x = jax.random.normal(kx, (2, 4, 16, 16), dtype=jnp.float32)   # NCHW

    y = jax.block_until_ready(mr_forward(x, w))
    y_ref = mr_reference(x, w)

    assert y.shape == x.shape
    assert y.dtype == x.dtype
    assert jnp.allclose(y, y_ref.astype(y.dtype), rtol=1e-5, atol=1e-5)

    print("KERNEL_OK")
</pallas_src>

<mosaic_0001>
module attributes {stable_mosaic.version = 11 : i64} {
  func.func @_poly_kernel(%arg0: i32, %arg1: memref<4xf32, #tpu.memory_space<smem>>, %arg2: memref<8x128xf32, #tpu.memory_space<vmem>>, %arg3: memref<8x128xf32, #tpu.memory_space<vmem>>) attributes {dimension_semantics = [#tpu.dimension_semantics<parallel>], iteration_bounds = array<i64: 2>, scalar_prefetch = 1 : i64, scratch_operands = 0 : i64, tpu.core_type = #tpu.core_type<tc>, window_params = [{transform_indices = @transform_0, window_bounds = array<i64: 8, 128>}, {transform_indices = @transform_1, window_bounds = array<i64: 8, 128>}]} {
    %c0 = arith.constant 0 : index
    %c0_0 = arith.constant 0 : index
    %0 = vector.load %arg2[%c0, %c0_0] : memref<8x128xf32, #tpu.memory_space<vmem>>, vector<8x128xf32>
    %c0_1 = arith.constant 0 : index
    %1 = memref.load %arg1[%c0_1] : memref<4xf32, #tpu.memory_space<smem>>
    %c1 = arith.constant 1 : index
    %2 = memref.load %arg1[%c1] : memref<4xf32, #tpu.memory_space<smem>>
    %c2 = arith.constant 2 : index
    %3 = memref.load %arg1[%c2] : memref<4xf32, #tpu.memory_space<smem>>
    %c3 = arith.constant 3 : index
    %4 = memref.load %arg1[%c3] : memref<4xf32, #tpu.memory_space<smem>>
    %5 = vector.broadcast %4 : f32 to vector<8x128xf32>
    %6 = arith.mulf %0, %5 : vector<8x128xf32>
    %7 = vector.broadcast %3 : f32 to vector<8x128xf32>
    %8 = arith.addf %6, %7 : vector<8x128xf32>
    %9 = arith.mulf %8, %0 : vector<8x128xf32>
    %10 = vector.broadcast %2 : f32 to vector<8x128xf32>
    %11 = arith.addf %9, %10 : vector<8x128xf32>
    %12 = arith.mulf %11, %0 : vector<8x128xf32>
    %13 = vector.broadcast %1 : f32 to vector<8x128xf32>
    %14 = arith.addf %12, %13 : vector<8x128xf32>
    %c0_2 = arith.constant 0 : index
    %c0_3 = arith.constant 0 : index
    %15 = vector.load %arg3[%c0_2, %c0_3] : memref<8x128xf32, #tpu.memory_space<vmem>>, vector<8x128xf32>
    tpu.vector_store %arg3[%c0_2, %c0_3], %14 {strides = array<i32>} : memref<8x128xf32, #tpu.memory_space<vmem>>, vector<8x128xf32>,
    return
  }
  func.func @transform_0(%arg0: i32, %arg1: memref<4xf32, #tpu.memory_space<smem>>) -> (i32, i32) {
    %c0_i32 = arith.constant 0 : i32
    %c0_i32_0 = arith.constant 0 : i32
    return %arg0, %c0_i32 : i32, i32
  }
  func.func @transform_1(%arg0: i32, %arg1: memref<4xf32, #tpu.memory_space<smem>>) -> (i32, i32) {
    %c0_i32 = arith.constant 0 : i32
    %c0_i32_0 = arith.constant 0 : i32
    return %arg0, %c0_i32 : i32, i32
  }
}

</mosaic_0001>

<bundles_post_ra>
// kernel: tpu_custom_call.1
= control target key start
LH: loop header
LB: loop body
LE: loop exit
PB: predicated region body
PF: predicated region fallthrough
CT: control target
= control target key end

     0   :  { %s600_s0 = inlined_call_operand.hbm [shape: f32[4], index: 0, kind: input, shape index: {}]   ;;  %s601_s1 = inlined_call_operand.hbm [shape: f32[16,128], index: 1, kind: input, shape index: {}]   ;;  %s602_s2 = inlined_call_operand.hbm [shape: f32[16,128], index: 2, kind: output, shape index: {}]  }
   0x1   :  { %s299_s11 = scalar_lea.hbm %s600_s0, 16 }
   0x2   :  { %p300_p0 = scmp.ne.s32.totalorder %s600_s0, %s299_s11  ;;  %p303_p1 = scmp.lt.u32.totalorder %s299_s11, %s600_s0 }
   0x4   :  { %p305_p2 = pnand %p303_p1, %p300_p0 }
   0x6   :  { %308 = shalt.err (!%p305_p2)  }
   0x7   :  { %s409_s16 = smov [#allocation3]  }
   0x8   :  { %8 = dma.hbm_to_smem %s600_s0, 16, %s409_s16, [#allocation2] }
   0x9   :  { %383 = dma.done.wait [#allocation2], 16 }
   0xa   :  { %384 = vsyncadd [#allocation2], 4294967280 }
   0xb   :  { %10 = sfence }
   0xc   :  { %11 = vsyncpa [#allocation5], 0 }
   0xd   :  { %13 = vsyncpa [#allocation5 + $0x1], 0 }
   0xe   :  { %14 = vsyncpa [#allocation6], 0 }
   0xf   :  { %16 = vsyncpa [#allocation6 + $0x1], 0  ;;  %s439_s19 = smov 0   ;;  %s441_s20 = smov 0  }
  0x10   :  { %s443_s21 = smov 0   ;;  %s445_s22 = smov 0  }
  0x11 LB: > { %s460_s0 = sadd.s32 4294967295, %s407_s22   ;;  %s237_s23 = sadd.s32 4294967294, %s407_s22   ;;  %s407_s22 = sphi %s445_s22, %s617_s22   ;;  %s403_s21 = sphi %s443_s21, %s616_s21   ;;  %s399_s20 = sphi %s441_s20, %s615_s20   ;;  %s395_s19 = sphi %s439_s19, %s614_s19  }
  0x12   : > { %s464_s24 = sadd.s32 1, %s407_s22   ;;  %s29_s25 = sadd.s32 1, %s403_s21 }
  0x13   : > { %s26_s26 = ssub.s32 %s407_s22, %s464_s24  ;;  %p36_p3 = scmp.ne.s32.totalorder %s403_s21, %s399_s20 }
  0x14   : > { %p27_p4 = scmp.eq.s32.totalorder %s26_s26, 0  ;;  %p37_p5 = scmp.eq.s32.totalorder %s407_s22, 0 }
  0x15   : > { %p42_p6 = scmp.ne.s32.totalorder %s399_s20, %s395_s19  ;;  %p43_p7 = scmp.eq.s32.totalorder %s460_s0, 0 }
  0x16   : > { %s476_s27 = scalar_select %p27_p4, %s403_s21, %s29_s25  }
  0x17   : > { %p478_p8 = por %p37_p5, %p36_p3  ;;  %p482_p9 = por %p43_p7, %p42_p6 }
  0x18   : > { %p66_p10 = scmp.eq.s32.totalorder %s460_s0, 1  ;;  %p72_p11 = scmp.eq.s32.totalorder %s237_s23, 1 }
  0x19   : > { %p264_p13 = scmp.lt.s32.totalorder %s407_s22, 2  ;;  %s92_s4 = sand.u32 1, %s403_s21  }
  0x1a   : > { %p489_p0 = por %p66_p10, %p36_p3  ;;  %p493_p1 = por %p72_p11, %p42_p6 }
  0x1b   : > { %s241_s5 = sshll.u32 %s407_s22, 7  ;;  %s240_s6 = sshll.u32 %s92_s4, 3 }
  0x1c   : > { %s606_s30 = scalar_select %p489_p0, 1, 0 }
  0x1d   : > { %s607_s3 = scalar_select %p493_p1, 1, 0 }
  0x1e   : > { %s502_s9 = scalar_lea.hbm %s601_s1, %s241_s5  ;;  %s96_s10 = scalar_lea.vmem [#allocation4], %s240_s6 }
  0x1f   : > { %s103_s11 = sshll.u32 %s96_s10, 4  ;;  %p506_p2 = pnand %p264_p13, %p478_p8  ;;  %s510_s11 = int_to_ptr.vmem [resolvable:$true] %s103_s11 }
  0x20   : > { %s93_s13 = scalar_lea.sflag [#allocation5], %s92_s4  ;;  %s309_s14 = scalar_lea.hbm %s502_s9, 128 }
  0x21   : > { %p310_p5 = scmp.ne.s32.totalorder %s502_s9, %s309_s14  ;;  %p311_p6 = pneg %p506_p2 }
  0x22   : > { %s314_s17 = scalar_lea.hbm %s601_s1, 256  ;;  %p315_p8 = scmp.lt.u32.totalorder %s502_s9, %s601_s1 }
  0x23   : > { %p312_p7 = pnand %p311_p6, %p310_p5  ;;  %p316_p11 = scmp.lt.u32.totalorder %s314_s17, %s309_s14 }
  0x24   : > { %p318_p12 = scmp.lt.u32.totalorder %s309_s14, %s502_s9 }
  0x25   : > { %p313_p10 = pneg %p312_p7  ;;  %p317_p13 = por %p316_p11, %p315_p8 }
  0x27   : > { %p319_p3 = por %p318_p12, %p317_p13 }
  0x29   : > { %p320_p4 = pnand %p319_p3, %p313_p10 }
  0x2b   : > { %323 = shalt.err (!%p320_p4)
}
  0x2c   : > { %s324_s25 = scalar_lea.vmem %s510_s11, 128  ;;  %s410_s26 = smov [#allocation4]  }
  0x2d   : > { %p325_p5 = scmp.ne.s32.totalorder %s510_s11, %s324_s25  ;;  %s329_s28 = sshll.u32 %s410_s26, 4  ;;  %s330_s28 = int_to_ptr.vmem [resolvable:$false] %s329_s28 }
  0x2e   : > { %s331_s4 = scalar_lea.vmem %s330_s28, 256  ;;  %p332_p0 = scmp.lt.s32.totalorder %s510_s11, %s330_s28 }
  0x2f   : > { %p327_p7 = pnand %p325_p5, %p311_p6  ;;  %p333_p8 = scmp.lt.s32.totalorder %s331_s4, %s324_s25 }
  0x31   : > { %p328_p1 = pneg %p327_p7  ;;  %p334_p11 = por %p333_p8, %p332_p0 }
  0x33   : > { %p335_p12 = pnand %p334_p11, %p328_p1 }
  0x35   : > { %338 = shalt.err (!%p335_p12)
}
  0x36   : > { %259 = dma.hbm_to_vmem [thread:$0]  (!%p506_p2), %s502_s9, 128, %s510_s11, %s93_s13  }
  0x37   : > { %p609_p3 = scmp.lt.s32.totalorder %s407_s22, 3  ;;  %p610_p4 = scmp.ge.s32.totalorder %s407_s22, 1 }
  0x39   : > { %p109_p6 = pnand %p610_p4, %p609_p3 }
  0x3a   : > { %s544_s5 = sand.u32 (!%p109_p6), 1, %s399_s20  }
  0x3b   : > { %112 = sbr.rel (%p109_p6) target bundleno = 100 (0x64), region = 24  ;;  %s243_s6 = sshll.u32 (!%p109_p6), %s544_s5, 3 }
  0x3c   : > { %s115_s7 = scalar_lea.sflag (!%p109_p6), [#allocation5], %s544_s5  ;;  %s118_s8 = scalar_lea.vmem (!%p109_p6), [#allocation4], %s243_s6 }
  0x42   : > { %386 = dma.done.wait (%p482_p9), %s115_s7, 128  }
  0x43   : > { %388 = vsyncadd (%p482_p9), %s115_s7, 4294967168  ;;  %s246_s9 = sld [smem:[#allocation3 + $0x2]]  ;;  %s247_s10 = sld [smem:[#allocation3 + $0x3]]  ;;  %v137_v0 = vld [vmem:[%s118_s8] sm:$0xff] }
  0x44   : > { %s245_s11 = sld [smem:[#allocation3 + $0x1]]  ;;  %s138_s12 = sld [smem:[#allocation3]] }
  0x45   : > { %s136_s13 = scalar_lea.vmem [#allocation7], %s243_s6  ;;  %s249_s29 = sshll.u32 %s460_s0, 7 }
  0x46   : > { %s167_s14 = sshll.u32 %s136_s13, 4  ;;  %s558_s17 = scalar_lea.hbm %s602_s2, %s249_s29  ;;  %s553_s14 = int_to_ptr.vmem [resolvable:$true] %s167_s14 }
  0x47   : > { %s154_s18 = scalar_lea.sflag [#allocation6], %s544_s5  ;;  %s339_s23 = scalar_lea.vmem %s553_s14, 128 }
  0x48   : > { %p340_p9 = scmp.ne.s32.totalorder %s553_s14, %s339_s23  ;;  %p611_p0 = scmp.ne.s32.totalorder %s606_s30, 0 }
  0x49   : > { %v142_v1 = vstv %s247_s10  ;;  %v144_v2 = vstv %s246_s9  ;;  %s411_s0 = smov [#allocation7]  }
  0x4a   : > { %v143_v3 = vmul.f32 %v142_v1, %v137_v0  ;;  %v147_v5 = vstv %s245_s11  ;;  %v150_v8 = vstv %s138_s12  ;;  %p341_p1 = pnand %p340_p9, %p611_p0  ;;  %s343_s25 = sshll.u32 %s411_s0, 4  ;;  %s344_s25 = int_to_ptr.vmem [resolvable:$false] %s343_s25 }
  0x4b   : > { %s345_s26 = scalar_lea.vmem %s344_s25, 256  ;;  %p346_p10 = scmp.lt.s32.totalorder %s553_s14, %s344_s25 }
  0x4c   : > { %v145_v4 = vadd.f32 %v144_v2, %v143_v3  ;;  %p342_p2 = pneg %p341_p1  ;;  %p347_p13 = scmp.lt.s32.totalorder %s345_s26, %s339_s23 }
  0x4e   : > { %v146_v6 = vmul.f32 %v145_v4, %v137_v0  ;;  %p348_p5 = por %p347_p13, %p346_p10 }
  0x50   : > { %v148_v7 = vadd.f32 %v147_v5, %v146_v6  ;;  %p349_p7 = pnand %p348_p5, %p342_p2 }
  0x52   : > { %v149_v9 = vmul.f32 %v148_v7, %v137_v0 }
  0x54   : > { %v151_v10 = vadd.f32 %v150_v8, %v149_v9 }
  0x56   : > { %152 = vst [vmem:[%s136_s13] sm:$0xff] %v151_v10 }
  0x57   : > { %352 = shalt.err (!%p349_p7)
}
  0x58   : > { %s353_s28 = scalar_lea.hbm %s558_s17, 128  ;;  %s357_s6 = scalar_lea.hbm %s602_s2, 256 }
  0x59   : > { %p354_p8 = scmp.ne.s32.totalorder %s558_s17, %s353_s28  ;;  %p358_p3 = scmp.lt.u32.totalorder %s558_s17, %s602_s2 }
  0x5a   : > { %p359_p4 = scmp.lt.u32.totalorder %s357_s6, %s353_s28  ;;  %p361_p9 = scmp.lt.u32.totalorder %s353_s28, %s558_s17 }
  0x5b   : > { %p355_p11 = pnand %p354_p8, %p611_p0 }
  0x5c   : > { %p360_p6 = por %p359_p4, %p358_p3 }
  0x5d   : > { %p356_p12 = pneg %p355_p11 }
  0x5e   : > { %p362_p1 = por %p361_p9, %p360_p6 }
  0x60   : > { %p363_p2 = pnand %p362_p1, %p356_p12 }
  0x62   : > { %366 = shalt.err (!%p363_p2)
}
  0x63   : > { %254 = dma.vmem_to_hbm [thread:$0]  (%p611_p0), %s553_s14, 128, %s558_s17, %s154_s18  }
  0x64 PF: > { %s179_s9 = sand.u32 1, %s395_s19   ;;  %p612_p10 = scmp.ne.s32.totalorder %s607_s3, 0 }
  0x65   : > { %p613_p13 = scmp.ge.s32.totalorder %s407_s22, 2  ;;  %s180_s10 = scalar_lea.sflag [#allocation6], %s179_s9 }
  0x67   : > { %p261_p5 = pnand %p613_p13, %p612_p10 }
  0x69   : > { %390 = dma.done.wait (!%p261_p5), %s180_s10, 128  }
  0x6a   : > { %392 = vsyncadd (!%p261_p5), %s180_s10, 4294967168  ;;  %p19_p7 = scmp.ge.s32.totalorder %s464_s24, 4   ;;  %s614_s19 = smov %s399_s20 }
  0x6b   : > { %s615_s20 = smov %s403_s21  ;;  %s616_s21 = smov %s476_s27 }
  0x6c   : > { %s617_s22 = smov %s464_s24  ;;  %21 = sbr.rel (!%p19_p7) target bundleno = 17 (0x11), region = 69 }
  0x73   :  { %185 = vsyncpa [#allocation5], 1 }
  0x74   :  { %187 = vsyncpa [#allocation5 + $0x1], 1 }
  0x75   :  { %188 = vsyncpa [#allocation6], 1 }
  0x76   :  { %190 = vsyncpa [#allocation6 + $0x1], 1 }

</bundles_post_ra>
